<compile_context>
chip_gen: v6e
topology: v6e:2x2x1
jax: 0.10.0
libtpu: 0.0.40
codegen_flags: <defaults>
</compile_context>

<pallas_src>
import functools

import numpy as np
import jax
import jax.numpy as jnp
from jax.experimental import pallas as pl
from jax.experimental.pallas import tpu as pltpu


# ---------------------------------------------------------------------------
# Static (trace-time) helpers
# ---------------------------------------------------------------------------

def _pad_amounts(target, current):
    """Replicates the PyTorch module's left/right (top/bot) computation."""
    if target == current:
        return 0, 0
    diff = target - current
    lo = diff // 2
    hi = diff - lo
    return lo, hi


def _src_indices(out_size, up_size, pad_lo):
    """Output index -> source index in the original (pre-upsample) x2 axis.

    Combines reflection padding of the upsampled tensor with the nearest 2x
    upsample (up[s] = x2[s // 2]).
    """
    idx = []
    for i in range(out_size):
        s = i - pad_lo
        if s < 0:
            s = -s
        elif s >= up_size:
            s = 2 * (up_size - 1) - s
        idx.append(s // 2)
    return idx


def _round_up(x, m):
    return ((x + m - 1) // m) * m


def _cdiv(a, b):
    return (a + b - 1) // b


def _choose_batch_block(nc, per_plane_bytes, sub, budget_bytes,
                        prefer_steps=4, b_max=512):
    """Planes per grid step for the fused path (multiple of `sub`)."""
    if nc <= sub:
        return nc                      # full-extent leading block
    cap = (budget_bytes // max(per_plane_bytes, 1)) // sub * sub
    cap = max(sub, min(b_max, cap))
    b = min(cap, _round_up(nc, sub))
    # Target >= prefer_steps grid steps (>= 2 pipelined steps per v7x TC).
    if nc >= prefer_steps * sub and _cdiv(nc, b) < prefer_steps:
        b = max(sub, _round_up(_cdiv(nc, prefer_steps), sub))
    return b


def _choose_plane_block(nc, per_plane_bytes, budget_bytes,
                        prefer_steps=4, max_planes=32):
    """Planes per grid step for the two-pass fallback."""
    cap = max(1, budget_bytes // max(per_plane_bytes, 1))
    bp = max(1, min(nc, max_planes, cap))
    if nc >= prefer_steps and _cdiv(nc, bp) < prefer_steps:
        bp = max(1, _cdiv(nc, prefer_steps))
    return bp


def _vmem_limit(total_bytes):
    # Explicit scoped-VMEM limit: above v5e's 16 MiB default when needed,
    # capped well below v7x's 64 MiB physical VMEM per TensorCore.
    return int(min(max(total_bytes + (4 << 20), 16 << 20), 48 << 20))


# ---------------------------------------------------------------------------
# Kernels
# ---------------------------------------------------------------------------

def _fused_kernel(x_ref, pt_ref, o_ref, *, acc_dtype):
    # x_ref: (B, H2*W2), pt_ref: (H2*W2, H1*W1), o_ref: (B, H1*W1)
    x = x_ref[...]
    if x.dtype != pt_ref.dtype:
        x = x.astype(pt_ref.dtype)
    o_ref[...] = jnp.dot(
        x, pt_ref[...], preferred_element_type=acc_dtype).astype(o_ref.dtype)


def _two_pass_kernel(x_ref, st_ref, r_ref, o_ref, *, bp, acc_dtype):
    # x_ref: (Bp, H2, W2), st_ref: (W2, W1), r_ref: (H1, H2), o_ref: (Bp, H1, W1)
    st = st_ref[...]
    r = r_ref[...]
    for b in range(bp):                       # static unroll over the plane block
        x = x_ref[b]
        if x.dtype != st.dtype:
            x = x.astype(st.dtype)
        tmp = jnp.dot(x, st, preferred_element_type=acc_dtype)      # (H2, W1)
        tmp = tmp.astype(r.dtype)
        out = jnp.dot(r, tmp, preferred_element_type=acc_dtype)     # (H1, W1)
        o_ref[b] = out.astype(o_ref.dtype)


# ---------------------------------------------------------------------------
# Wrapper
# ---------------------------------------------------------------------------

def upsample_reshape_eval(x1, x2, *, fused=None,
                          max_fused_selector_bytes=8 << 20,
                          fused_intensity_ridge=240,
                          tile_budget_bytes=8 << 20):
    """Pallas equivalent of UpsampleReshape_eval.forward(x1, x2).

    x1, x2: NCHW arrays. Only x1's shape is used (as in the PyTorch module).
    Returns x2 nearest-upsampled by 2x and reflection-padded to x1's H/W.
    """
    N, C, H1, W1 = x1.shape
    n2, c2, H2, W2 = x2.shape
    assert (N, C) == (n2, c2), "x1 / x2 must share batch and channel dims"
    if not jnp.issubdtype(x2.dtype, jnp.floating):
        raise TypeError(
            f"upsample_reshape_eval routes values through the MXU; expected a "
            f"floating dtype for x2, got {x2.dtype}")

    H_up, W_up = 2 * H2, 2 * W2
    assert H1 >= H_up and W1 >= W_up, (
        "x1 spatial dims must be >= 2x-upsampled x2 dims (same contract as the "
        "PyTorch module)")
    top, bot = _pad_amounts(H1, H_up)
    left, right = _pad_amounts(W1, W_up)
    # Same constraint as nn.ReflectionPad2d: pad must be < input dim.
    assert max(top, bot) < H_up and max(left, right) < W_up, (
        "reflection padding must be smaller than the upsampled size")

    row_src = _src_indices(H1, H_up, top)    # output row -> x2 row
    col_src = _src_indices(W1, W_up, left)   # output col -> x2 col

    # One-hot selectors / accumulation are exact in any dtype: use bf16 for
    # bf16 inputs (fast bf16 MXU path, half the VMEM, no cast pass), f32 else.
    is_bf16 = x2.dtype == jnp.bfloat16
    sel_dtype = jnp.bfloat16 if is_bf16 else jnp.float32
    acc_dtype = jnp.bfloat16 if is_bf16 else jnp.float32
    sel_itemsize = 2 if is_bf16 else 4

    NC = N * C
    in_elems, out_elems = H2 * W2, H1 * W1
    dtype_bytes = x2.dtype.itemsize
    sub = max(8, 32 // dtype_bytes)          # sublane packing multiple

    fused_sel_bytes = in_elems * out_elems * sel_itemsize
    if fused is None:
        fits_vmem = fused_sel_bytes <= max_fused_selector_bytes
        # Arithmetic-intensity gate: the fused matmul does 2*K FLOPs per output
        # element (K = H2*W2); keep it only while the kernel stays HBM-bound on
        # the most conservative target chip.
        hbm_bound = 2 * in_elems <= fused_intensity_ridge * dtype_bytes
        fused = fits_vmem and hbm_bound

    if fused:
        # --- single fused gather: out_flat = x_flat @ P^T -------------------
        # P^T[s, o] = 1 where o = i*W1 + j and s = row_src[i]*W2 + col_src[j]
        pt = np.zeros((in_elems, out_elems), dtype=np.float32)
        rs = np.asarray(row_src) * W2
        cs = np.asarray(col_src)
        src = (rs[:, None] + cs[None, :]).reshape(-1)        # (H1*W1,)
        pt[src, np.arange(out_elems)] = 1.0
        pt = jnp.asarray(pt, dtype=sel_dtype)                # (H2*W2, H1*W1)

        per_plane = 2 * (in_elems + out_elems) * dtype_bytes  # dbl-buffered tiles
        B = _choose_batch_block(NC, per_plane, sub, tile_budget_bytes)
        # Selector is grid-invariant but still gets a 2-deep pipeline buffer:
        # count both copies when sizing the scoped-VMEM limit.
        total_vmem = B * per_plane + 2 * fused_sel_bytes

        x_flat = x2.reshape(NC, in_elems)
        cost = pl.CostEstimate(
            flops=2 * NC * in_elems * out_elems,
            transcendentals=0,
            bytes_accessed=NC * (in_elems + out_elems) * dtype_bytes
            + fused_sel_bytes)

        out_flat = pl.pallas_call(
            functools.partial(_fused_kernel, acc_dtype=acc_dtype),
            out_shape=jax.ShapeDtypeStruct((NC, out_elems), x2.dtype),
            grid_spec=pltpu.PrefetchScalarGridSpec(
                num_scalar_prefetch=0,
                grid=(_cdiv(NC, B),),            # ragged last block is masked
                in_specs=[
                    pl.BlockSpec((B, in_elems), lambda i: (i, 0)),
                    pl.BlockSpec((in_elems, out_elems), lambda i: (0, 0)),
                ],
                out_specs=pl.BlockSpec((B, out_elems), lambda i: (i, 0)),
            ),
            compiler_params=pltpu.CompilerParams(
                dimension_semantics=("parallel",),
                vmem_limit_bytes=_vmem_limit(total_vmem)),
            cost_estimate=cost,
        )(x_flat, pt)
        return out_flat.reshape(N, C, H1, W1)

    # --- fallback for large planes: two gather matmuls per plane, batched ----
    st = np.zeros((W2, W1), dtype=np.float32)                # S^T (col gather)
    st[np.asarray(col_src), np.arange(W1)] = 1.0
    r = np.zeros((H1, H2), dtype=np.float32)                 # R   (row gather)
    r[np.arange(H1), np.asarray(row_src)] = 1.0
    st = jnp.asarray(st, dtype=sel_dtype)
    r = jnp.asarray(r, dtype=sel_dtype)

    per_plane = 2 * (in_elems + out_elems) * dtype_bytes      # dbl-buffered tiles
    Bp = _choose_plane_block(NC, per_plane, tile_budget_bytes)
    sel_total = (W2 * W1 + H1 * H2) * sel_itemsize
    total_vmem = Bp * per_plane + 2 * sel_total

    cost = pl.CostEstimate(
        flops=2 * NC * (H2 * W2 * W1 + H1 * H2 * W1),
        transcendentals=0,
        bytes_accessed=NC * (in_elems + out_elems) * dtype_bytes + sel_total)

    # TODO(synk): the fallback output's lane dim is W1 (often not a multiple of
    # 128); a lane-flattened (Bp, H1*W1) store would need an in-kernel relayout.
    x_planes = x2.reshape(NC, H2, W2)
    out = pl.pallas_call(
        functools.partial(_two_pass_kernel, bp=Bp, acc_dtype=acc_dtype),
        out_shape=jax.ShapeDtypeStruct((NC, H1, W1), x2.dtype),
        grid_spec=pltpu.PrefetchScalarGridSpec(
            num_scalar_prefetch=0,
            grid=(_cdiv(NC, Bp),),               # ragged last block is masked
            in_specs=[
                pl.BlockSpec((Bp, H2, W2), lambda i: (i, 0, 0)),
                pl.BlockSpec((W2, W1), lambda i: (0, 0)),
                pl.BlockSpec((H1, H2), lambda i: (0, 0)),
            ],
            out_specs=pl.BlockSpec((Bp, H1, W1), lambda i: (i, 0, 0)),
        ),
        compiler_params=pltpu.CompilerParams(
            dimension_semantics=("parallel",),
            vmem_limit_bytes=_vmem_limit(total_vmem)),
        cost_estimate=cost,
    )(x_planes, st, r)
    return out.reshape(N, C, H1, W1)


# ---------------------------------------------------------------------------
# Self-test
# ---------------------------------------------------------------------------

if __name__ == "__main__":
    key = jax.random.PRNGKey(0)
    k1, k2, k3, k4 = jax.random.split(key, 4)

    def ref_np(x1_shape, x2_np):
        up = x2_np.repeat(2, axis=2).repeat(2, axis=3)
        t, b = _pad_amounts(x1_shape[2], up.shape[2])
        l, rr = _pad_amounts(x1_shape[3], up.shape[3])
        return np.pad(up, ((0, 0), (0, 0), (t, b), (l, rr)), mode="reflect")

    # 1) fused (kron selector) path, f32.
    x1 = jax.random.normal(k1, (2, 4, 16, 16), dtype=jnp.float32)
    x2 = jax.random.normal(k2, (2, 4, 7, 7), dtype=jnp.float32)
    ref = ref_np(x1.shape, np.asarray(x2))
    out = jax.block_until_ready(upsample_reshape_eval(x1, x2))
    np.testing.assert_allclose(np.asarray(out), ref, rtol=1e-5, atol=1e-5)

    # 2) batched two-matmul fallback path (forced).
    out_two = jax.block_until_ready(upsample_reshape_eval(x1, x2, fused=False))
    np.testing.assert_allclose(np.asarray(out_two), ref, rtol=1e-5, atol=1e-5)

    # 3) ragged NC (not a multiple of the batch block): exercises Pallas's
    #    partial-last-block masking on both paths (no host pad/slice anymore).
    x1r = jax.random.normal(k3, (3, 5, 18, 20), dtype=jnp.float32)
    x2r = jax.random.normal(k4, (3, 5, 7, 9), dtype=jnp.float32)
    refr = ref_np(x1r.shape, np.asarray(x2r))
    outr = jax.block_until_ready(upsample_reshape_eval(x1r, x2r))
    np.testing.assert_allclose(np.asarray(outr), refr, rtol=1e-5, atol=1e-5)
    outr2 = jax.block_until_ready(upsample_reshape_eval(x1r, x2r, fused=False))
    np.testing.assert_allclose(np.asarray(outr2), refr, rtol=1e-5, atol=1e-5)

    # 4) bf16 path: bf16 selectors + bf16 accumulation; one-hot gather is exact.
    x2_bf16 = x2.astype(jnp.bfloat16)
    out_bf16 = jax.block_until_ready(upsample_reshape_eval(x1, x2_bf16))
    ref_bf16 = ref_np(x1.shape, np.asarray(x2_bf16).astype(np.float32))
    np.testing.assert_allclose(
        np.asarray(out_bf16).astype(np.float32), ref_bf16, rtol=0, atol=0)

    print("KERNEL_OK")
</pallas_src>

<mosaic_0001>
module attributes {stable_mosaic.version = 11 : i64} {
  func.func @_fused_kernel(%arg0: i32, %arg1: memref<8x49xf32, #tpu.memory_space<vmem>>, %arg2: memref<49x256xf32, #tpu.memory_space<vmem>>, %arg3: memref<8x256xf32, #tpu.memory_space<vmem>>) attributes {dimension_semantics = [#tpu.dimension_semantics<parallel>], iteration_bounds = array<i64: 1>, scalar_prefetch = 0 : i64, scratch_operands = 0 : i64, tpu.core_type = #tpu.core_type<tc>, window_params = [{transform_indices = @transform_0, window_bounds = array<i64: 8, 49>}, {pipeline_mode = #tpu.pipeline_mode<synchronous>, transform_indices = @transform_1, window_bounds = array<i64: 49, 256>}, {transform_indices = @transform_2, window_bounds = array<i64: 8, 256>}]} {
    %c0 = arith.constant 0 : index
    %c0_0 = arith.constant 0 : index
    %0 = vector.load %arg1[%c0, %c0_0] : memref<8x49xf32, #tpu.memory_space<vmem>>, vector<8x49xf32>
    %c0_1 = arith.constant 0 : index
    %c0_2 = arith.constant 0 : index
    %1 = vector.load %arg2[%c0_1, %c0_2] : memref<49x256xf32, #tpu.memory_space<vmem>>, vector<49x256xf32>
    %cst = arith.constant dense<0.000000e+00> : vector<8x256xf32>
    %2 = tpu.matmul %0, %1, %cst {dimension_numbers = #tpu.dot_dimension_numbers<[1], [0], [0], [1], [0, 0, 1, 1], [], []>} : vector<8x49xf32>, vector<49x256xf32>, vector<8x256xf32> -> vector<8x256xf32>
    %c0_3 = arith.constant 0 : index
    %c0_4 = arith.constant 0 : index
    %3 = vector.load %arg3[%c0_3, %c0_4] : memref<8x256xf32, #tpu.memory_space<vmem>>, vector<8x256xf32>
    tpu.vector_store %arg3[%c0_3, %c0_4], %2 {strides = array<i32>} : memref<8x256xf32, #tpu.memory_space<vmem>>, vector<8x256xf32>,
    return
  }
  func.func @transform_0(%arg0: i32) -> (i32, i32) {
    %c0_i32 = arith.constant 0 : i32
    %c0_i32_0 = arith.constant 0 : i32
    return %arg0, %c0_i32 : i32, i32
  }
  func.func @transform_1(%arg0: i32) -> (i32, i32) {
    %c0_i32 = arith.constant 0 : i32
    %c0_i32_0 = arith.constant 0 : i32
    %c0_i32_1 = arith.constant 0 : i32
    return %c0_i32, %c0_i32_0 : i32, i32
  }
  func.func @transform_2(%arg0: i32) -> (i32, i32) {
    %c0_i32 = arith.constant 0 : i32
    %c0_i32_0 = arith.constant 0 : i32
    return %arg0, %c0_i32 : i32, i32
  }
}

</mosaic_0001>

<bundles_post_ra>
// kernel: tpu_custom_call.1
= control target key start
LH: loop header
LB: loop body
LE: loop exit
PB: predicated region body
PF: predicated region fallthrough
CT: control target
= control target key end

     0   :  { %7 = vsyncpa [#allocation3], 0  ;;  %s258_s0 = inlined_call_operand.hbm [shape: f32[8,49], index: 0, kind: input, shape index: {}]   ;;  %s259_s1 = inlined_call_operand.hbm [shape: f32[49,256], index: 1, kind: input, shape index: {}]   ;;  %s260_s2 = inlined_call_operand.hbm [shape: f32[8,256], index: 2, kind: output, shape index: {}]  }
   0x1   :  { %8 = vsyncpa [#allocation6], 0 }
   0x2   :  { %9 = vsyncpa [#allocation4], 0  ;;  %s228_s9 = smov [#allocation2]   ;;  %s229_s11 = smov [#allocation5]  }
   0x3   :  { %s16_s10 = sshll.u32 %s228_s9, 4  ;;  %s25_s12 = sshll.u32 %s229_s11, 4  ;;  %s17_s10 = int_to_ptr.vmem [resolvable:$true] %s16_s10  ;;  %s26_s12 = int_to_ptr.vmem [resolvable:$true] %s25_s12 }
   0x4   :  { %s170_s13 = scalar_lea.vmem %s17_s10, 128  ;;  %p175_p1 = scmp.lt.s32.totalorder %s17_s10, %s17_s10 }
   0x5   :  { %p171_p0 = scmp.ne.s32.totalorder %s17_s10, %s170_s13  ;;  %p176_p2 = scmp.lt.s32.totalorder %s170_s13, %s170_s13 }
   0x7   :  { %p177_p3 = por %p176_p2, %p175_p1 }
   0x9   :  { %p178_p4 = pnand %p177_p3, %p171_p0 }
   0xb   :  { %181 = shalt.err (!%p178_p4)
}
   0xc   :  { %19 = dma.hbm_to_vmem [thread:$0]  %s258_s0, 128, %s17_s10, [#allocation3]  }
   0xd   :  { %s190_s16 = scalar_lea.vmem %s26_s12, 1792  ;;  %p195_p6 = scmp.lt.s32.totalorder %s26_s12, %s26_s12 }
   0xe   :  { %p191_p5 = scmp.ne.s32.totalorder %s26_s12, %s190_s16  ;;  %p196_p7 = scmp.lt.s32.totalorder %s190_s16, %s190_s16 }
  0x10   :  { %p197_p8 = por %p196_p7, %p195_p6 }
  0x12   :  { %p198_p9 = pnand %p197_p8, %p191_p5 }
  0x14   :  { %201 = shalt.err (!%p198_p9)
}
  0x15   :  { %s230_s17 = smov 256   ;;  %s231_s18 = smov 16  }
  0x16   :  { %31 = dma.hbm_to_vmem [thread:$0]  %s259_s1, 1792, %s26_s12, [#allocation6], %s230_s17, %s230_s17, %s231_s18  }
  0x17   :  { %222 = dma.done.wait [#allocation3], 128  }
  0x18   :  { %223 = vsyncadd [#allocation3], 4294967168 }
  0x19   :  { %224 = dma.done.wait [#allocation6], 1792  }
  0x1a   :  { %225 = vsyncadd [#allocation6], 4294965504  ;;  %v232_v0 = vmov 0.0   ;;  %vm57_vm0 = vcmask 1040384   ;;  %v52_v1 = vld [vmem:[#allocation5 + $0x68] sm:$0x1] }
  0x1b   :  { %128 = vmatprep.mubr.f32.mxu0 %v232_v0  ;;  %v51_v2 = vld [vmem:[#allocation5 + $0x60] sm:$0x1]  ;;  %v50_v3 = vld [vmem:[#allocation5 + $0x58] sm:$0xff]  ;;  %153 = vmatprep.subr.msk.mxu0 %vm57_vm0, %v52_v1  ;;  %v49_v4 = vld [vmem:[#allocation5 + $0x50] sm:$0xff]  ;;  %vm53_vm1 = vcmask 400384   ;;  %s233_s0 = smov [#allocation7]  }
  0x1c   :  { %154 = vmatpush1.msk.msra.mxu0 %vm57_vm0, %v51_v2  ;;  %v48_v5 = vld [vmem:[#allocation5 + $0x48] sm:$0xff]  ;;  %v47_v6 = vld [vmem:[#allocation5 + $0x40] sm:$0xff]  ;;  %v46_v7 = vld [vmem:[#allocation5 + $0x38] sm:$0xff]  ;;  %s143_s1 = sshll.u32 %s233_s0, 4  ;;  %s144_s1 = int_to_ptr.vmem [resolvable:$true] %s143_s1 }
  0x1d   :  { %84 = vmatprep.subr.mxu0 %v50_v3  ;;  %v45_v8 = vld [vmem:[#allocation5 + $0x30] sm:$0xff]  ;;  %v44_v9 = vld [vmem:[#allocation5 + $0x28] sm:$0xff]  ;;  %v43_v10 = vld [vmem:[#allocation5 + $0x20] sm:$0xff]  ;;  %s202_s21 = scalar_lea.vmem %s144_s1, 256  ;;  %p207_p11 = scmp.lt.s32.totalorder %s144_s1, %s144_s1 }
  0x1e   :  { %85 = vmatpush1.msra.mxu0 %v49_v4  ;;  %v42_v11 = vld [vmem:[#allocation5 + $0x18] sm:$0xff]  ;;  %v41_v12 = vld [vmem:[#allocation5 + $0x10] sm:$0xff]  ;;  %v40_v13 = vld [vmem:[#allocation5 + $0x8] sm:$0xff]  ;;  %p203_p10 = scmp.ne.s32.totalorder %s144_s1, %s202_s21  ;;  %p208_p12 = scmp.lt.s32.totalorder %s202_s21, %s202_s21 }
  0x1f   :  { %86 = vmatprep.subr.mxu0 %v48_v5  ;;  %v39_v14 = vld [vmem:[#allocation5] sm:$0xff]  ;;  %v38_v15 = vld [vmem:[#allocation2] sm:$0xff] }
  0x20   :  { %87 = vmatpush1.msra.mxu0 %v47_v6  ;;  %p209_p13 = por %p208_p12, %p207_p11 }
  0x21   :  { %88 = vmatprep.subr.mxu0 %v46_v7 }
  0x22   :  { %89 = vmatpush1.msra.mxu0 %v45_v8  ;;  %p210_p0 = pnand %p209_p13, %p203_p10 }
  0x23   :  { %90 = vmatprep.subr.mxu0 %v44_v9 }
  0x24   :  { %91 = vmatpush1.msra.mxu0 %v43_v10 }
  0x25   :  { %92 = vmatprep.subr.mxu0 %v42_v11 }
  0x26   :  { %93 = vmatpush1.msra.mxu0 %v41_v12 }
  0x27   :  { %94 = vmatprep.subr.mxu0 %v40_v13 }
  0x28   :  { %95 = vmatpush1.msra.mxu0 %v39_v14 }
  0x29   :  { %155 = vmatmul.mubr.msk.f32.vlgmr.msra.gmra.mxu0 %vm53_vm1, %v38_v15 }
  0xe9   :  { %v130_v16 = vpop.f32.mrf.mxu0 }
  0xea   :  { %135 = vst [vmem:[#allocation7] sm:$0xff] %v130_v16 }
  0xeb   :  { %v132_v17 = vpop.f32.mrf.mxu0 }
  0xec   :  { %136 = vst [vmem:[#allocation7 + $0x8] sm:$0xff] %v132_v17 }
  0xed   :  { %213 = shalt.err (!%p210_p0)
}
  0xee   :  { %146 = dma.vmem_to_hbm [thread:$0]  %s144_s1, 256, %s260_s2, [#allocation4]  }
  0xef   :  { %226 = dma.done.wait [#allocation4], 256  }
  0xf0   :  { %227 = vsyncadd [#allocation4], 4294967040 }
  0xf1   :  { %150 = vsyncpa [#allocation3], 1 }
  0xf2   :  { %151 = vsyncpa [#allocation6], 1 }
  0xf3   :  { %152 = vsyncpa [#allocation4], 1 }

</bundles_post_ra>
